<compile_context>
chip_gen: v5e
topology: v5e:2x2
jax: 0.10.0
libtpu: 0.0.40
codegen_flags: <defaults>
</compile_context>

<pallas_src>
from functools import partial

import jax
import jax.numpy as jnp
from jax.experimental import pallas as pl
from jax.experimental.pallas import tpu as pltpu


def _round_up(x: int, m: int) -> int:
    return (x + m - 1) // m * m


def _discriminator_kernel(xT_ref, w1_ref, b1_ref, w2_ref, b2_ref,
                          w3_ref, b3_ref, o_ref):
    # h1^T = relu(w1^T @ x^T + b1)       -> (hidden, TB), batch in lanes
    h1 = jnp.dot(w1_ref[...], xT_ref[...], preferred_element_type=jnp.float32)
    h1 = jnp.maximum(h1 + b1_ref[...], 0.0)

    # h2^T = relu(w2^T @ h1^T + b2)      -> (hidden, TB)
    h2 = jnp.dot(w2_ref[...], h1.astype(w2_ref.dtype),
                 preferred_element_type=jnp.float32)
    h2 = jnp.maximum(h2 + b2_ref[...], 0.0)

    # fc3: (1, hidden) @ (hidden, TB) -> (1, TB), already lane-dense.
    logits = jnp.dot(w3_ref[...], h2.astype(w3_ref.dtype),
                     preferred_element_type=jnp.float32)
    o_ref[...] = jax.nn.sigmoid(logits + b3_ref[0]).astype(o_ref.dtype)


def prepare_params(params, *, use_bf16=False):
    """One-time, off-hot-path parameter prep: transpose / reshape / cast."""
    w1, b1, w2, b2, w3, b3 = params
    mm_dtype = jnp.bfloat16 if use_bf16 else jnp.float32
    w1T = jnp.asarray(w1, jnp.float32).T.astype(mm_dtype)            # (hidden, in+ext)
    w2T = jnp.asarray(w2, jnp.float32).T.astype(mm_dtype)            # (hidden, hidden)
    w3T = jnp.asarray(w3, jnp.float32).reshape(-1, 1).T.astype(mm_dtype)  # (1, hidden)
    b1c = jnp.asarray(b1, jnp.float32).reshape(-1, 1)                # (hidden, 1)
    b2c = jnp.asarray(b2, jnp.float32).reshape(-1, 1)                # (hidden, 1)
    b3s = jnp.asarray(b3, jnp.float32).reshape(1)                    # SMEM scalar
    return (w1T, b1c, w2T, b2c, w3T, b3s)


@partial(jax.jit, static_argnames=("tile_batch",))
def tabular_discriminator(features, extreme_code, prepped, *, tile_batch=8192):
    """features: (B, in_dim), extreme_code: (B, ext_dim) -> (B, 1)."""
    w1T, b1, w2T, b2, w3T, b3 = prepped
    B, in_dim = features.shape
    ext_dim = extreme_code.shape[1]
    D0 = in_dim + ext_dim
    hidden = w1T.shape[0]
    assert w1T.shape[1] == D0
    mm_dtype = w1T.dtype

    # Batch tile: lanes of the transposed input, multiple of 128. Keep the
    # default capped at 8192 so VMEM pressure stays low on every generation.
    TB = min(_round_up(tile_batch, 128), _round_up(B, 128))
    B_pad = _round_up(B, TB)

    # Fold extreme_code into the feature block, go batch-in-lanes, pad the
    # ragged tail. Inside jit this fuses into one XLA prologue.
    x = jnp.concatenate(
        (features.astype(mm_dtype), extreme_code.astype(mm_dtype)), axis=1)
    xT = x.T                                                   # (D0, B)
    if B_pad != B:
        xT = jnp.pad(xT, ((0, 0), (0, B_pad - B)))

    grid = (B_pad // TB,)

    def const(shape):
        # Weights/biases: same block every grid step -> stay VMEM-resident.
        return pl.BlockSpec(shape, lambda i: tuple(0 for _ in shape))

    # NOTE: on v7x, pltpu.CORE_PARALLEL on this axis would split the batch
    # grid across the 2 TensorCores; pltpu.PARALLEL is kept here for
    # portability across v5e/v6e/v7x.
    out = pl.pallas_call(
        _discriminator_kernel,
        out_shape=jax.ShapeDtypeStruct((1, B_pad), jnp.float32),
        grid=grid,
        in_specs=[
            pl.BlockSpec((D0, TB), lambda i: (0, i)),           # x^T tile
            const((hidden, D0)),                                # w1^T
            const((hidden, 1)),                                 # b1 column
            const((hidden, hidden)),                            # w2^T
            const((hidden, 1)),                                 # b2 column
            const((1, hidden)),                                 # w3 row
            pl.BlockSpec(memory_space=pltpu.MemorySpace.SMEM),  # b3 scalar
        ],
        out_specs=pl.BlockSpec((1, TB), lambda i: (0, i)),
        compiler_params=pltpu.CompilerParams(
            dimension_semantics=(pltpu.PARALLEL,)),
    )(xT, w1T, b1, w2T, b2, w3T, b3)

    return out[0, :B].reshape(B, 1)


def init_params(key, in_dim=20, extreme_dim=1, hidden_dim=64):
    """Deterministic init mimicking nn.Linear default (uniform +/- 1/sqrt(fan_in))."""
    k1, k2, k3, k4, k5, k6 = jax.random.split(key, 6)
    d0 = in_dim + extreme_dim

    def lin(kw, kb, fan_in, fan_out):
        bound = 1.0 / jnp.sqrt(jnp.float32(fan_in))
        w = jax.random.uniform(kw, (fan_in, fan_out), jnp.float32, -bound, bound)
        b = jax.random.uniform(kb, (1, fan_out), jnp.float32, -bound, bound)
        return w, b

    w1, b1 = lin(k1, k2, d0, hidden_dim)
    w2, b2 = lin(k3, k4, hidden_dim, hidden_dim)
    w3, b3 = lin(k5, k6, hidden_dim, 1)
    return (w1, b1, w2, b2, w3, b3)


def _reference(features, extreme_code, params):
    w1, b1, w2, b2, w3, b3 = params
    x = jnp.concatenate((features, extreme_code), axis=1)
    h1 = jnp.maximum(x @ w1 + b1, 0.0)
    h2 = jnp.maximum(h1 @ w2 + b2, 0.0)
    return jax.nn.sigmoid(h2 @ w3 + b3)


if __name__ == "__main__":
    key = jax.random.PRNGKey(0)
    kf, kc, kp = jax.random.split(key, 3)

    B, in_dim, extreme_dim, hidden_dim = 8, 20, 1, 64
    features = jax.random.normal(kf, (B, in_dim), jnp.float32)
    extreme_code = jax.random.normal(kc, (B, extreme_dim), jnp.float32)
    params = init_params(kp, in_dim, extreme_dim, hidden_dim)
    ref = _reference(features, extreme_code, params)

    # f32 path (default): tight tolerance vs. reference.
    prepped_f32 = prepare_params(params, use_bf16=False)
    out = jax.block_until_ready(
        tabular_discriminator(features, extreme_code, prepped_f32))
    assert out.shape == (B, 1)
    assert jnp.allclose(out, ref, atol=1e-5, rtol=1e-5)

    # bf16-operand path (v6e/v7x MXU-native), f32 accumulation: looser tol.
    prepped_bf16 = prepare_params(params, use_bf16=True)
    out_bf16 = jax.block_until_ready(
        tabular_discriminator(features, extreme_code, prepped_bf16))
    assert out_bf16.shape == (B, 1)
    assert jnp.allclose(out_bf16, ref, atol=2e-2, rtol=0.0)

    # Exercise the multi-step batch grid + ragged-tail padding path.
    B2 = 300
    kf2, kc2 = jax.random.split(jax.random.PRNGKey(1))
    f2 = jax.random.normal(kf2, (B2, in_dim), jnp.float32)
    c2 = jax.random.normal(kc2, (B2, extreme_dim), jnp.float32)
    out2 = jax.block_until_ready(
        tabular_discriminator(f2, c2, prepped_f32, tile_batch=128))
    ref2 = _reference(f2, c2, params)
    assert out2.shape == (B2, 1)
    assert jnp.allclose(out2, ref2, atol=1e-5, rtol=1e-5)

    print("KERNEL_OK")
</pallas_src>

<mosaic_0001>
module attributes {stable_mosaic.version = 11 : i64} {
  func.func @_discriminator_kernel(%arg0: i32, %arg1: memref<21x128xf32, #tpu.memory_space<vmem>>, %arg2: memref<64x21xf32, #tpu.memory_space<vmem>>, %arg3: memref<64x1xf32, #tpu.memory_space<vmem>>, %arg4: memref<64x64xf32, #tpu.memory_space<vmem>>, %arg5: memref<64x1xf32, #tpu.memory_space<vmem>>, %arg6: memref<1x64xf32, #tpu.memory_space<vmem>>, %arg7: memref<1xf32, #tpu.memory_space<smem>>, %arg8: memref<1x128xf32, #tpu.memory_space<vmem>>) attributes {dimension_semantics = [#tpu.dimension_semantics<parallel>], iteration_bounds = array<i64: 1>, scalar_prefetch = 0 : i64, scratch_operands = 0 : i64, tpu.core_type = #tpu.core_type<tc>, window_params = [{transform_indices = @transform_0, window_bounds = array<i64: 21, 128>}, {pipeline_mode = #tpu.pipeline_mode<synchronous>, transform_indices = @transform_1, window_bounds = array<i64: 64, 21>}, {pipeline_mode = #tpu.pipeline_mode<synchronous>, transform_indices = @transform_2, window_bounds = array<i64: 64, 1>}, {pipeline_mode = #tpu.pipeline_mode<synchronous>, transform_indices = @transform_3, window_bounds = array<i64: 64, 64>}, {pipeline_mode = #tpu.pipeline_mode<synchronous>, transform_indices = @transform_4, window_bounds = array<i64: 64, 1>}, {pipeline_mode = #tpu.pipeline_mode<synchronous>, transform_indices = @transform_5, window_bounds = array<i64: 1, 64>}, {transform_indices = @transform_6, window_bounds = array<i64: 1>}, {transform_indices = @transform_7, window_bounds = array<i64: 1, 128>}]} {
    %c0 = arith.constant 0 : index
    %c0_0 = arith.constant 0 : index
    %0 = vector.load %arg2[%c0, %c0_0] : memref<64x21xf32, #tpu.memory_space<vmem>>, vector<64x21xf32>
    %c0_1 = arith.constant 0 : index
    %c0_2 = arith.constant 0 : index
    %1 = vector.load %arg1[%c0_1, %c0_2] : memref<21x128xf32, #tpu.memory_space<vmem>>, vector<21x128xf32>
    %cst = arith.constant dense<0.000000e+00> : vector<64x128xf32>
    %2 = tpu.matmul %0, %1, %cst {dimension_numbers = #tpu.dot_dimension_numbers<[1], [0], [0], [1], [0, 0, 1, 1], [], []>} : vector<64x21xf32>, vector<21x128xf32>, vector<64x128xf32> -> vector<64x128xf32>
    %c0_3 = arith.constant 0 : index
    %c0_4 = arith.constant 0 : index
    %3 = vector.load %arg3[%c0_3, %c0_4] : memref<64x1xf32, #tpu.memory_space<vmem>>, vector<64x1xf32>
    %4 = vector.broadcast %3 : vector<64x1xf32> to vector<64x128xf32>
    %5 = arith.addf %2, %4 : vector<64x128xf32>
    %cst_5 = arith.constant 0.000000e+00 : f32
    %6 = vector.broadcast %cst_5 : f32 to vector<64x128xf32>
    %7 = arith.maximumf %5, %6 : vector<64x128xf32>
    %c0_6 = arith.constant 0 : index
    %c0_7 = arith.constant 0 : index
    %8 = vector.load %arg4[%c0_6, %c0_7] : memref<64x64xf32, #tpu.memory_space<vmem>>, vector<64x64xf32>
    %cst_8 = arith.constant dense<0.000000e+00> : vector<64x128xf32>
    %9 = tpu.matmul %8, %7, %cst_8 {dimension_numbers = #tpu.dot_dimension_numbers<[1], [0], [0], [1], [0, 0, 1, 1], [], []>} : vector<64x64xf32>, vector<64x128xf32>, vector<64x128xf32> -> vector<64x128xf32>
    %c0_9 = arith.constant 0 : index
    %c0_10 = arith.constant 0 : index
    %10 = vector.load %arg5[%c0_9, %c0_10] : memref<64x1xf32, #tpu.memory_space<vmem>>, vector<64x1xf32>
    %11 = vector.broadcast %10 : vector<64x1xf32> to vector<64x128xf32>
    %12 = arith.addf %9, %11 : vector<64x128xf32>
    %cst_11 = arith.constant 0.000000e+00 : f32
    %13 = vector.broadcast %cst_11 : f32 to vector<64x128xf32>
    %14 = arith.maximumf %12, %13 : vector<64x128xf32>
    %c0_12 = arith.constant 0 : index
    %c0_13 = arith.constant 0 : index
    %15 = vector.load %arg6[%c0_12, %c0_13] : memref<1x64xf32, #tpu.memory_space<vmem>>, vector<1x64xf32>
    %cst_14 = arith.constant dense<0.000000e+00> : vector<1x128xf32>
    %16 = tpu.matmul %15, %14, %cst_14 {dimension_numbers = #tpu.dot_dimension_numbers<[1], [0], [0], [1], [0, 0, 1, 1], [], []>} : vector<1x64xf32>, vector<64x128xf32>, vector<1x128xf32> -> vector<1x128xf32>
    %c0_15 = arith.constant 0 : index
    %17 = memref.load %arg7[%c0_15] : memref<1xf32, #tpu.memory_space<smem>>
    %18 = vector.broadcast %17 : f32 to vector<1x128xf32>
    %19 = arith.addf %16, %18 : vector<1x128xf32>
    %20 = arith.negf %19 : vector<1x128xf32>
    %21 = math.exp %20 : vector<1x128xf32>
    %cst_16 = arith.constant 1.000000e+00 : f32
    %22 = vector.broadcast %cst_16 : f32 to vector<1x128xf32>
    %23 = arith.addf %22, %21 : vector<1x128xf32>
    %24 = arith.divf %22, %23 : vector<1x128xf32>
    %c0_17 = arith.constant 0 : index
    %c0_18 = arith.constant 0 : index
    %25 = vector.load %arg8[%c0_17, %c0_18] : memref<1x128xf32, #tpu.memory_space<vmem>>, vector<1x128xf32>
    tpu.vector_store %arg8[%c0_17, %c0_18], %24 {strides = array<i32>} : memref<1x128xf32, #tpu.memory_space<vmem>>, vector<1x128xf32>,
    return
  }
  func.func @transform_0(%arg0: i32) -> (i32, i32) {
    %c0_i32 = arith.constant 0 : i32
    %c0_i32_0 = arith.constant 0 : i32
    return %c0_i32, %arg0 : i32, i32
  }
  func.func @transform_1(%arg0: i32) -> (i32, i32) {
    %c0_i32 = arith.constant 0 : i32
    %c0_i32_0 = arith.constant 0 : i32
    %c0_i32_1 = arith.constant 0 : i32
    return %c0_i32, %c0_i32_0 : i32, i32
  }
  func.func @transform_2(%arg0: i32) -> (i32, i32) {
    %c0_i32 = arith.constant 0 : i32
    %c0_i32_0 = arith.constant 0 : i32
    %c0_i32_1 = arith.constant 0 : i32
    return %c0_i32, %c0_i32_0 : i32, i32
  }
  func.func @transform_3(%arg0: i32) -> (i32, i32) {
    %c0_i32 = arith.constant 0 : i32
    %c0_i32_0 = arith.constant 0 : i32
    %c0_i32_1 = arith.constant 0 : i32
    return %c0_i32, %c0_i32_0 : i32, i32
  }
  func.func @transform_4(%arg0: i32) -> (i32, i32) {
    %c0_i32 = arith.constant 0 : i32
    %c0_i32_0 = arith.constant 0 : i32
    %c0_i32_1 = arith.constant 0 : i32
    return %c0_i32, %c0_i32_0 : i32, i32
  }
  func.func @transform_5(%arg0: i32) -> (i32, i32) {
    %c0_i32 = arith.constant 0 : i32
    %c0_i32_0 = arith.constant 0 : i32
    %c0_i32_1 = arith.constant 0 : i32
    return %c0_i32, %c0_i32_0 : i32, i32
  }
  func.func @transform_6(%arg0: i32) -> i32 {
    %c0_i32 = arith.constant 0 : i32
    %c0_i32_0 = arith.constant 0 : i32
    return %c0_i32 : i32
  }
  func.func @transform_7(%arg0: i32) -> (i32, i32) {
    %c0_i32 = arith.constant 0 : i32
    %c0_i32_0 = arith.constant 0 : i32
    return %c0_i32, %arg0 : i32, i32
  }
}

</mosaic_0001>

<bundles_post_ra>
// kernel: tabular_discriminator.1
= control target key start
LH: loop header
LB: loop body
LE: loop exit
PB: predicated region body
PF: predicated region fallthrough
CT: control target
= control target key end

     0   :  { %vm111_vm0 = vcmask 1044480   ;;  %v382_v0 = vmov 0   ;;  %vm86_vm1 = vcmask 171008   ;;  %vm220_vm2 = vcmask 523264   ;;  %s554_s2 = inlined_call_operand.vmem [shape: f32[64,1], index: 2, kind: input, shape index: {}]   ;;  %s555_s0 = inlined_call_operand.vmem [shape: f32[21,128], index: 0, kind: input, shape index: {}]   ;;  %s556_s1 = inlined_call_operand.vmem [shape: f32[64,21], index: 1, kind: input, shape index: {}]   ;;  %s557_s4 = inlined_call_operand.vmem [shape: f32[64,1], index: 4, kind: input, shape index: {}]   ;;  %s558_s3 = inlined_call_operand.vmem [shape: f32[64,64], index: 3, kind: input, shape index: {}]   ;;  %s559_s5 = inlined_call_operand.vmem [shape: f32[1,64], index: 5, kind: input, shape index: {}]   ;;  %s560_s6 = inlined_call_operand.<no memory space> [shape: f32[1], index: 6, kind: input, shape index: {}]   ;;  %s561_s7 = inlined_call_operand.vmem [shape: f32[1,128], index: 7, kind: output, shape index: {}]  }
   0x1   :  { %376 = vset.pattern.permute.xlu1 %v382_v0  ;;  %375 = vset.pattern.permute.xlu0 %v382_v0  ;;  %v45_v1 = vld [vmem:[%s554_s2 + $0x38] sm:$0xff]  ;;  %v43_v2 = vld [vmem:[%s554_s2 + $0x28] sm:$0xff]  ;;  %v37_v3 = vld [vmem:[%s555_s0 + $0x10] sm:$0x1f] }
   0x2   :  { %83 = vperm.xlu0 %375, %v45_v1   ;;  %73 = vperm.xlu1 %376, %v43_v2   ;;  %v36_v4 = vld [vmem:[%s555_s0 + $0x8] sm:$0xff]  ;;  %v35_v5 = vld [vmem:[%s555_s0] sm:$0xff]  ;;  %v44_v8 = vld [vmem:[%s554_s2 + $0x30] sm:$0xff] }
   0x3   :  { %344 = vmatpush.msk.msra.mxu0 %vm111_vm0, %v37_v3  ;;  %363 = vmatpush.msk.msra.mxu2 %vm111_vm0, %v37_v3  ;;  %v27_v6 = vld [vmem:[%s556_s1] sm:$0xff]  ;;  %v32_v7 = vld [vmem:[%s556_s1 + $0x28] sm:$0xff]  ;;  %v41_v10 = vld [vmem:[%s554_s2 + $0x18] sm:$0xff] }
   0x4   :  { %377 = vset.pattern.permute.xlu2 %v382_v0  ;;  %v42_v9 = vld [vmem:[%s554_s2 + $0x20] sm:$0xff]  ;;  %v28_v11 = vld [vmem:[%s556_s1 + $0x8] sm:$0xff]  ;;  %v33_v12 = vld [vmem:[%s556_s1 + $0x30] sm:$0xff] }
   0x5   :  { %129 = vmatpush.msra.mxu0 %v36_v4  ;;  %364 = vmatpush.msra.mxu2 %v36_v4  ;;  %v40_v13 = vld [vmem:[%s554_s2 + $0x10] sm:$0xff]  ;;  %v39_v14 = vld [vmem:[%s554_s2 + $0x8] sm:$0xff]  ;;  %v38_v15 = vld [vmem:[%s554_s2] sm:$0xff] }
   0x6   :  { %63 = vperm.xlu2 %377, %v41_v10   ;;  %v29_v16 = vld [vmem:[%s556_s1 + $0x10] sm:$0xff]  ;;  %v34_v17 = vld [vmem:[%s556_s1 + $0x38] sm:$0xff]  ;;  %v177_v20 = vld [vmem:[%s557_s4 + $0x28] sm:$0xff] }
   0x7   :  { %130 = vmatpush.msra.mxu0 %v35_v5  ;;  %365 = vmatpush.msra.mxu2 %v35_v5  ;;  %v179_v18 = vld [vmem:[%s557_s4 + $0x38] sm:$0xff]  ;;  %v178_v19 = vld [vmem:[%s557_s4 + $0x30] sm:$0xff]  ;;  %v176_v22 = vld [vmem:[%s557_s4 + $0x20] sm:$0xff] }
   0x8   :  { %345 = vmatmul.msk.f32.vlgmr.msra.gmra.mxu0 %vm86_vm1, %v27_v6  ;;  %350 = vmatmul.msk.f32.vlgmr.msra.gmra.mxu2 %vm86_vm1, %v32_v7  ;;  %v30_v21 = vld [vmem:[%s556_s1 + $0x18] sm:$0xff]  ;;  %v174_v24 = vld [vmem:[%s557_s4 + $0x10] sm:$0xff]  ;;  %v31_v25 = vld [vmem:[%s556_s1 + $0x20] sm:$0xff] }
   0x9   :  { %v175_v23 = vld [vmem:[%s557_s4 + $0x18] sm:$0xff]  ;;  %v173_v26 = vld [vmem:[%s557_s4 + $0x8] sm:$0xff]  ;;  %v172_v27 = vld [vmem:[%s557_s4] sm:$0xff] }
   0xa   :  { %78 = vperm.xlu0 %375, %v44_v8   ;;  %68 = vperm.xlu1 %376, %v42_v9   ;;  %v164_v60 = vld [vmem:[%s558_s3] sm:$0xff]  ;;  %v165_v62 = vld [vmem:[%s558_s3 + $0x8] sm:$0xff]  ;;  %v166_v0 = vld [vmem:[%s558_s3 + $0x10] sm:$0xff] }
   0xb   :  { %v168_v61 = vld [vmem:[%s558_s3 + $0x20] sm:$0xff]  ;;  %v169_v63 = vld [vmem:[%s558_s3 + $0x28] sm:$0xff]  ;;  %v170_v1 = vld [vmem:[%s558_s3 + $0x30] sm:$0xff] }
   0xc   :  { %v167_v2 = vld [vmem:[%s558_s3 + $0x18] sm:$0xff] }
   0xd   :  { %v171_v3 = vld [vmem:[%s558_s3 + $0x38] sm:$0xff] }
   0xe   :  { %58 = vperm.xlu2 %377, %v40_v13  }
  0x10   :  { %346 = vmatmul.msk.f32.gmra.mxu0 %vm86_vm1, %v28_v11  ;;  %351 = vmatmul.msk.f32.gmra.mxu2 %vm86_vm1, %v33_v12 }
  0x12   :  { %53 = vperm.xlu0 %375, %v39_v14   ;;  %48 = vperm.xlu1 %376, %v38_v15  }
  0x16   :  { %217 = vperm.xlu2 %377, %v179_v18  }
  0x18   :  { %347 = vmatmul.msk.f32.gmra.mxu0 %vm86_vm1, %v29_v16  ;;  %352 = vmatmul.msk.f32.gmra.mxu2 %vm86_vm1, %v34_v17 }
  0x1a   :  { %212 = vperm.xlu0 %375, %v178_v19   ;;  %207 = vperm.xlu1 %376, %v177_v20  }
  0x1e   :  { %202 = vperm.xlu2 %377, %v176_v22  }
  0x20   :  { %348 = vmatmul.msk.f32.gmra.mxu0 %vm86_vm1, %v30_v21 }
  0x22   :  { %197 = vperm.xlu0 %375, %v175_v23   ;;  %192 = vperm.xlu1 %376, %v174_v24  }
  0x26   :  { %187 = vperm.xlu2 %377, %v173_v26  }
  0x28   :  { %349 = vmatmul.msk.f32.gmra.mxu0 %vm86_vm1, %v31_v25 }
  0x2a   :  { %182 = vperm.xlu0 %375, %v172_v27  }
  0x60   :  { %v64_v39 = vpop.permute.xlu2 %63 }
  0x68   :  { %v59_v49 = vpop.permute.xlu2 %58 }
  0x70   :  { %v218_v8 = vpop.permute.xlu2 %217 }
  0x74   :  { %v84_v31 = vpop.permute.xlu0 %83  ;;  %v74_v33 = vpop.permute.xlu1 %73 }
  0x78   :  { %v203_v13 = vpop.permute.xlu2 %202 }
  0x7c   :  { %v79_v35 = vpop.permute.xlu0 %78  ;;  %v69_v43 = vpop.permute.xlu1 %68 }
  0x84   :  { %v54_v52 = vpop.permute.xlu0 %53  ;;  %v49_v53 = vpop.permute.xlu1 %48 }
  0x85   :  { %v132_v28 = vpop.f32.mrf.mxu0 }
  0x86   :  { %v133_v56 = vadd.f32 %v132_v28, %v49_v53  ;;  %v188_v28 = vpop.permute.xlu2 %187 }
  0x88   :  { %v156_v59 = vmax.f32 %v133_v56, 0.0 }
  0x8b   :  { %v147_v29 = vpop.f32.mrf.mxu2 }
  0x8c   :  { %v148_v41 = vadd.f32 %v147_v29, %v74_v33  ;;  %v213_v9 = vpop.permute.xlu0 %212  ;;  %v208_v12 = vpop.permute.xlu1 %207 }
  0x8d   :  { %v135_v30 = vpop.f32.mrf.mxu0 }
  0x8e   :  { %v161_v45 = vmax.f32 %v148_v41, 0.0  ;;  %v136_v54 = vadd.f32 %v135_v30, %v54_v52 }
  0x90   :  { %v157_v58 = vmax.f32 %v136_v54, 0.0 }
  0x93   :  { %v150_v32 = vpop.f32.mrf.mxu2 }
  0x94   :  { %v151_v37 = vadd.f32 %v150_v32, %v79_v35  ;;  %v198_v17 = vpop.permute.xlu0 %197  ;;  %v193_v25 = vpop.permute.xlu1 %192 }
  0x95   :  { %v138_v34 = vpop.f32.mrf.mxu0 }
  0x96   :  { %v162_v44 = vmax.f32 %v151_v37, 0.0  ;;  %v139_v50 = vadd.f32 %v138_v34, %v59_v49  ;;  %v296_v37 = vstv %s560_s6 }
  0x98   :  { %v158_v57 = vmax.f32 %v139_v50, 0.0 }
  0x9b   :  { %v153_v36 = vpop.f32.mrf.mxu2 }
  0x9c   :  { %v154_v38 = vadd.f32 %v153_v36, %v84_v31  ;;  %v183_v31 = vpop.permute.xlu0 %182  ;;  %v294_v36 = vld [vmem:[%s559_s5] sm:$0x1] }
  0x9d   :  { %v141_v40 = vpop.f32.mrf.mxu0 }
  0x9e   :  { %v163_v42 = vmax.f32 %v154_v38, 0.0  ;;  %v142_v47 = vadd.f32 %v141_v40, %v64_v39 }
  0xa0   :  { %253 = vmatpush.msra.mxu1 %v163_v42  ;;  %366 = vmatpush.msra.mxu3 %v163_v42  ;;  %v159_v55 = vmax.f32 %v142_v47, 0.0 }
  0xa2   :  { %254 = vmatpush.msra.mxu1 %v162_v44  ;;  %367 = vmatpush.msra.mxu3 %v162_v44 }
  0xa4   :  { %255 = vmatpush.msra.mxu1 %v161_v45  ;;  %368 = vmatpush.msra.mxu3 %v161_v45 }
  0xa5   :  { %v144_v46 = vpop.f32.mrf.mxu0 }
  0xa6   :  { %v145_v48 = vadd.f32 %v144_v46, %v69_v43 }
  0xa8   :  { %v160_v51 = vmax.f32 %v145_v48, 0.0 }
  0xaa   :  { %256 = vmatpush.msra.mxu1 %v160_v51  ;;  %369 = vmatpush.msra.mxu3 %v160_v51 }
  0xac   :  { %257 = vmatpush.msra.mxu1 %v159_v55  ;;  %370 = vmatpush.msra.mxu3 %v159_v55 }
  0xae   :  { %258 = vmatpush.msra.mxu1 %v158_v57  ;;  %371 = vmatpush.msra.mxu3 %v158_v57 }
  0xb0   :  { %259 = vmatpush.msra.mxu1 %v157_v58  ;;  %372 = vmatpush.msra.mxu3 %v157_v58 }
  0xb2   :  { %260 = vmatpush.msra.mxu1 %v156_v59  ;;  %373 = vmatpush.msra.mxu3 %v156_v59 }
  0xb3   :  { %353 = vmatmul.msk.f32.vlgmr.msra.gmra.mxu1 %vm220_vm2, %v164_v60  ;;  %357 = vmatmul.msk.f32.vlgmr.msra.gmra.mxu3 %vm220_vm2, %v168_v61 }
  0xbb   :  { %354 = vmatmul.msk.f32.gmra.mxu1 %vm220_vm2, %v165_v62  ;;  %358 = vmatmul.msk.f32.gmra.mxu3 %vm220_vm2, %v169_v63 }
  0xc3   :  { %355 = vmatmul.msk.f32.gmra.mxu1 %vm220_vm2, %v166_v0  ;;  %359 = vmatmul.msk.f32.gmra.mxu3 %vm220_vm2, %v170_v1 }
  0xcb   :  { %356 = vmatmul.msk.f32.gmra.mxu1 %vm220_vm2, %v167_v2  ;;  %360 = vmatmul.msk.f32.gmra.mxu3 %vm220_vm2, %v171_v3 }
 0x130   :  { %v262_v4 = vpop.f32.mrf.mxu1 }
 0x131   :  { %v263_v32 = vadd.f32 %v262_v4, %v183_v31 }
 0x133   :  { %v286_v35 = vmax.f32 %v263_v32, 0.0 }
 0x136   :  { %v274_v5 = vpop.f32.mrf.mxu3 }
 0x137   :  { %v275_v21 = vadd.f32 %v274_v5, %v203_v13 }
 0x138   :  { %v265_v6 = vpop.f32.mrf.mxu1 }
 0x139   :  { %v290_v26 = vmax.f32 %v275_v21, 0.0  ;;  %v266_v29 = vadd.f32 %v265_v6, %v188_v28 }
 0x13b   :  { %v287_v34 = vmax.f32 %v266_v29, 0.0 }
 0x13e   :  { %v277_v7 = vpop.f32.mrf.mxu3 }
 0x13f   :  { %v278_v18 = vadd.f32 %v277_v7, %v208_v12 }
 0x140   :  { %v268_v11 = vpop.f32.mrf.mxu1 }
 0x141   :  { %v291_v23 = vmax.f32 %v278_v18, 0.0  ;;  %v269_v27 = vadd.f32 %v268_v11, %v193_v25 }
 0x143   :  { %v288_v33 = vmax.f32 %v269_v27, 0.0 }
 0x146   :  { %v280_v10 = vpop.f32.mrf.mxu3 }
 0x147   :  { %v281_v15 = vadd.f32 %v280_v10, %v213_v9 }
 0x148   :  { %v271_v20 = vpop.f32.mrf.mxu1 }
 0x149   :  { %v292_v22 = vmax.f32 %v281_v15, 0.0  ;;  %v272_v24 = vadd.f32 %v271_v20, %v198_v17 }
 0x14b   :  { %v289_v30 = vmax.f32 %v272_v24, 0.0 }
 0x14e   :  { %v283_v14 = vpop.f32.mrf.mxu3 }
 0x14f   :  { %v284_v16 = vadd.f32 %v283_v14, %v218_v8 }
 0x151   :  { %v293_v19 = vmax.f32 %v284_v16, 0.0 }
 0x153   :  { %308 = vmatpush.msrb.mxu2 %v293_v19 }
 0x155   :  { %309 = vmatpush.msrb.mxu2 %v292_v22 }
 0x157   :  { %310 = vmatpush.msrb.mxu2 %v291_v23 }
 0x159   :  { %311 = vmatpush.msrb.mxu2 %v290_v26 }
 0x15b   :  { %312 = vmatpush.msrb.mxu2 %v289_v30 }
 0x15d   :  { %313 = vmatpush.msrb.mxu2 %v288_v33 }
 0x15f   :  { %314 = vmatpush.msrb.mxu2 %v287_v34 }
 0x161   :  { %315 = vmatpush.msrb.mxu2 %v286_v35 }
 0x162   :  { %361 = vmatmul.msk.f32.vlgmr.msrb.gmra.mxu2 %vm220_vm2, %v294_v36 }
 0x1e5   :  { %v317_v38 = vpop.f32.mrf.mxu2 }
 0x1e6   :  { %v318_v39 = vadd.f32 %v317_v38, %v296_v37 }
 0x1e8   :  { %v362_v40 = vmul.f32 -1.442695, %v318_v39 }
 0x1ea   :  { %378 = vpow2.f32 %v362_v40 }
 0x1f0   :  { %v379_v41 = vpop.eup %378 }
 0x1f1   :  { %v323_v42 = vadd.f32 1.0, %v379_v41 }
 0x1f3   :  { %380 = vrcp.f32 %v323_v42  ;;  %v335_v46 = vand.u32 2147483648, %v323_v42  ;;  %v333_v48 = vand.u32 2147483647, %v323_v42  ;;  %vm329_vm4 = vweird.f32 %v323_v42 }
 0x1f5   :  { %v336_v50 = vor.u32 1.1754944e-38, %v335_v46  ;;  %vm334_vm6 = vcmp.eq.f32.partialorder %v333_v48, 8.507059e+37 }
 0x1f9   :  { %v381_v43 = vpop.eup %380 }
 0x1fa   :  { %v325_v44 = vmul.f32 %v381_v43, %v323_v42  ;;  %vm330_vm3 = vweird.f32 %v381_v43 }
 0x1fb   :  { %vm331_vm5 = vmor %vm329_vm4, %vm330_vm3 }
 0x1fc   :  { %v326_v45 = vsub.f32 1.0, %v325_v44 }
 0x1fe   :  { %v327_v47 = vmul.f32 %v381_v43, %v326_v45 }
 0x200   :  { %v328_v49 = vadd.f32 %v381_v43, %v327_v47 }
 0x202   :  { %v332_v51 = vsel %vm331_vm5, %v381_v43, %v328_v49 }
 0x203   :  { %v337_v52 = vsel %vm334_vm6, %v336_v50, %v332_v51 }
 0x204   :  { %339 = vst [vmem:[%s561_s7] sm:$0x1] %v337_v52 }

</bundles_post_ra>
